<compile_context>
chip_gen: v7x
topology: tpu7x:2x2x1
jax: 0.10.0
libtpu: 0.0.40
codegen_flags: <defaults>
</compile_context>

<pallas_src>
import functools

import jax
import jax.numpy as jnp
from jax.experimental import pallas as pl
from jax.experimental.pallas import tpu as pltpu

LANES = 128
_MAX_CHUNKS_PER_TILE = 8192          # keep per-tile sequential f32 adds bounded
_FALLBACK_VMEM_BYTES = 64 * 1024 * 1024


def _tpu_caps():
    """Best-effort query of VMEM capacity and TensorCores per chip."""
    vmem_bytes = None
    num_cores = 1
    try:
        info = pltpu.get_tpu_info()
        v = getattr(info, "vmem_capacity_bytes", None)
        if isinstance(v, int) and v > 0:
            vmem_bytes = v
        for name in ("num_cores", "cores_per_chip", "tensorcore_count",
                     "num_tensorcores", "core_count"):
            c = getattr(info, name, None)
            if isinstance(c, int) and c > 1:
                num_cores = c
                break
    except Exception:
        pass
    return vmem_bytes, num_cores


def _dice_sums_kernel(p_ref, t_ref, pt_ref, pp_ref, tt_ref, *, S, ts, tps, unroll):
    """Accumulate lane-dense per-row partial sums over spatial tiles.

    p_ref / t_ref : (BC, ts) blocks of the flattened inputs (original dtype).
    pt/pp/tt_ref  : (BC, 128) f32 accumulators (one per grid split), resident
                    across the reduction ("arbitrary") grid axis.
    """
    c = pl.program_id(0)      # split index
    k = pl.program_id(1)      # spatial tile within split ("arbitrary")

    @pl.when(k == 0)
    def _():
        pt_ref[...] = jnp.zeros_like(pt_ref)
        pp_ref[...] = jnp.zeros_like(pp_ref)
        tt_ref[...] = jnp.zeros_like(tt_ref)

    BC = p_ref.shape[0]
    lanes = pt_ref.shape[-1]
    n_chunks = ts // lanes

    # Global element offset of this tile (never past S: the wrapper guarantees
    # every grid step maps to a real tile, so at most the last one is partial).
    base = (c * tps + k) * ts

    zeros = jnp.zeros((BC, lanes), jnp.float32)
    init = (zeros, zeros, zeros)

    def fast_body(j, carry):
        apt, app, att = carry
        off = pl.multiple_of(j * lanes, lanes)
        p = p_ref[:, pl.ds(off, lanes)].astype(jnp.float32)
        t = t_ref[:, pl.ds(off, lanes)].astype(jnp.float32)
        return apt + p * t, app + p * p, att + t * t

    is_full = base + ts <= S

    @pl.when(is_full)
    def _():
        # Hot path: no masking work at all (pure load/mul/add streaming).
        apt, app, att = jax.lax.fori_loop(
            0, n_chunks, fast_body, init, unroll=unroll)
        pt_ref[...] += apt
        pp_ref[...] += app
        tt_ref[...] += att

    @pl.when(jnp.logical_not(is_full))
    def _():
        # Cold path: only the single partial tail tile of the whole volume.
        col = jax.lax.broadcasted_iota(jnp.int32, (BC, lanes), 1)

        def masked_body(j, carry):
            apt, app, att = carry
            off = pl.multiple_of(j * lanes, lanes)
            valid = (S - base) - j * lanes
            m = col < valid
            p = jnp.where(m, p_ref[:, pl.ds(off, lanes)].astype(jnp.float32), 0.0)
            t = jnp.where(m, t_ref[:, pl.ds(off, lanes)].astype(jnp.float32), 0.0)
            return apt + p * t, app + p * p, att + t * t

        apt, app, att = jax.lax.fori_loop(
            0, n_chunks, masked_body, init, unroll=unroll)
        pt_ref[...] += apt
        pp_ref[...] += app
        tt_ref[...] += att


@functools.partial(jax.jit, static_argnames=("spatial_tile", "num_splits"))
def el_dice_loss(pred, target, *, spatial_tile=None, num_splits=None):
    """Pallas implementation of ELDiceLoss.forward(pred, target)."""
    assert pred.shape == target.shape and pred.ndim == 5
    B, C = pred.shape[0], pred.shape[1]
    S = pred.shape[2] * pred.shape[3] * pred.shape[4]
    BC = B * C

    # Free row-major views; no padding and no dtype cast (the kernel casts
    # each streamed chunk to f32 itself, so bf16 inputs stream at 2B/elem).
    # TODO(synk): for bf16 inputs the multiplies could stay packed bf16 on
    # v6e/v7x and widen only for the accumulate; kept f32 for exactness.
    p2 = pred.reshape(BC, S)
    t2 = target.reshape(BC, S)
    p_bytes = jnp.dtype(p2.dtype).itemsize
    t_bytes = jnp.dtype(t2.dtype).itemsize

    # Chip-generation-dependent VMEM budgets.
    vmem_bytes, num_cores = _tpu_caps()
    if vmem_bytes is None:
        vmem_bytes = _FALLBACK_VMEM_BYTES
    if vmem_bytes >= 96 * 1024 * 1024:          # v5e / v6e: 128 MiB physical
        input_budget = 48 * 1024 * 1024
        vmem_limit = 100 * 1024 * 1024
    else:                                       # v7x: 64 MiB physical
        input_budget = 28 * 1024 * 1024
        vmem_limit = 48 * 1024 * 1024

    # Spatial tile: as large as fits the double-buffered input VMEM budget,
    # a multiple of 128 lanes, and never larger than the spatial extent needs.
    if spatial_tile is None:
        ts = input_budget // (2 * BC * (p_bytes + t_bytes))
    else:
        ts = spatial_tile
    ts = (ts // LANES) * LANES
    ts = min(ts, _MAX_CHUNKS_PER_TILE * LANES)
    ts = max(LANES, min(ts, max(LANES, (S // LANES) * LANES)))

    # Split the spatial reduction across a leading grid axis only when the
    # chip actually has >1 TensorCore (or the caller forces it), and only when
    # the tile count can be made to divide the splits exactly (no redundant
    # re-DMA of a clamped tile).
    if num_splits is None:
        num_splits = num_cores if num_cores > 1 else 1
    num_splits = max(1, int(num_splits))

    num_tiles = pl.cdiv(S, ts)
    eff_splits = 1
    if num_splits > 1 and num_tiles >= num_splits:
        ts_try = ts
        found = False
        for _ in range(256):
            if ts_try < LANES:
                break
            if pl.cdiv(S, ts_try) % num_splits == 0:
                found = True
                break
            ts_try -= LANES
        if found:
            ts = ts_try
            num_tiles = pl.cdiv(S, ts)
            eff_splits = num_splits
    tps = num_tiles // eff_splits if eff_splits > 1 else num_tiles

    # Keep the unrolled load window inside the 64-vreg file:
    # live vregs ~ 3*ceil(BC/8) accumulators + 2*unroll*ceil(BC/8) inputs.
    row_vregs = pl.cdiv(BC, 8)
    unroll = max(1, min(8, 32 // max(1, row_vregs)))
    unroll = min(unroll, ts // LANES)

    in_spec = pl.BlockSpec((BC, ts), lambda c, k: (0, c * tps + k))
    out_spec = pl.BlockSpec((None, BC, LANES), lambda c, k: (c, 0, 0))
    out_sds = jax.ShapeDtypeStruct((eff_splits, BC, LANES), jnp.float32)

    if eff_splits > 1 and num_cores > 1 and hasattr(pltpu, "CORE_PARALLEL"):
        dim_sem = (pltpu.CORE_PARALLEL, pltpu.ARBITRARY)
    else:
        dim_sem = ("parallel", "arbitrary")

    cost = pl.CostEstimate(
        flops=6 * BC * S,
        transcendentals=0,
        bytes_accessed=BC * S * (p_bytes + t_bytes)
        + 3 * eff_splits * BC * LANES * 4,
    )

    pt, pp, tt = pl.pallas_call(
        functools.partial(_dice_sums_kernel, S=S, ts=ts, tps=tps, unroll=unroll),
        out_shape=[out_sds, out_sds, out_sds],
        grid_spec=pltpu.PrefetchScalarGridSpec(
            num_scalar_prefetch=0,
            grid=(eff_splits, tps),
            in_specs=[in_spec, in_spec],
            out_specs=[out_spec, out_spec, out_spec],
        ),
        compiler_params=pltpu.CompilerParams(
            dimension_semantics=dim_sem,
            vmem_limit_bytes=vmem_limit,
        ),
        cost_estimate=cost,
    )(p2, t2)

    # Collapse the split and lane axes, then the cheap per-batch combine that
    # exactly mirrors the PyTorch forward.
    pt = jnp.sum(pt, axis=(0, 2)).reshape(B, C)
    pp = jnp.sum(pp, axis=(0, 2)).reshape(B, C)
    tt = jnp.sum(tt, axis=(0, 2)).reshape(B, C)

    smooth = 1.0
    dice = jnp.sum(2.0 * pt / (pp + tt + smooth), axis=1) / C
    return jnp.clip(jnp.mean(jnp.power(-jnp.log(dice + 1e-5), 0.3)), 0.0, 2.0)


def _el_dice_loss_ref(pred, target):
    """Pure-JAX reference matching the PyTorch module, for validation."""
    smooth = 1.0
    C = pred.shape[1]
    dice = 0.0
    for i in range(C):
        p = pred[:, i].astype(jnp.float32)
        t = target[:, i].astype(jnp.float32)
        num = 2.0 * jnp.sum(p * t, axis=(1, 2, 3))
        den = jnp.sum(p * p, axis=(1, 2, 3)) + jnp.sum(t * t, axis=(1, 2, 3)) + smooth
        dice = dice + num / den
    dice = dice / C
    return jnp.clip(jnp.mean(jnp.power(-jnp.log(dice + 1e-5), 0.3)), 0.0, 2.0)


def _check(pred, target, rtol=1e-4, atol=1e-5, **kw):
    out = jax.block_until_ready(el_dice_loss(pred, target, **kw))
    ref = _el_dice_loss_ref(pred, target)
    assert jnp.allclose(out, ref, rtol=rtol, atol=atol), (out, ref, kw)


if __name__ == "__main__":
    key = jax.random.PRNGKey(0)

    def make(k, shape, dtype=jnp.float32):
        k1, k2 = jax.random.split(k)
        pred = jax.nn.sigmoid(jax.random.normal(k1, shape, dtype=jnp.float32))
        target = (jax.random.uniform(k2, shape) > 0.5).astype(jnp.float32)
        return pred.astype(dtype), target.astype(dtype)

    keys = jax.random.split(key, 4)

    # 1) S = 3*5*13 = 195: multi-tile with a masked partial tail tile.
    _check(*make(keys[0], (2, 4, 3, 5, 13)))
    # 2) S = 4*8*16 = 512: single exact tile, unmasked fast path only.
    _check(*make(keys[1], (2, 4, 4, 8, 16)))
    # 3) S = 8*10*16 = 1280 with explicit 2-way split and 256-lane tiles:
    #    5 tiles don't divide 2, so the tile shrinks to 128 -> 10 tiles split
    #    evenly, exercising the divisibility-search path (no redundant DMA).
    _check(*make(keys[2], (2, 4, 8, 10, 16)), spatial_tile=256, num_splits=2)
    # 4) S = 8*9*16 = 1152, 128-lane tiles, requested 2-way split: 9 tiles
    #    cannot be made divisible -> clean fallback to a single split, plus a
    #    bf16 input to exercise the in-kernel cast path.
    _check(*make(keys[3], (2, 4, 8, 9, 16), dtype=jnp.bfloat16),
           rtol=1e-3, atol=1e-4, spatial_tile=128, num_splits=2)

    print("KERNEL_OK")
</pallas_src>

<mosaic_0001>
module attributes {stable_mosaic.version = 11 : i64} {
  func.func @_dice_sums_kernel(%arg0: i32, %arg1: i32, %arg2: memref<8x128xf32, #tpu.memory_space<vmem>>, %arg3: memref<8x128xf32, #tpu.memory_space<vmem>>, %arg4: memref<1x8x128xf32, #tpu.memory_space<vmem>>, %arg5: memref<1x8x128xf32, #tpu.memory_space<vmem>>, %arg6: memref<1x8x128xf32, #tpu.memory_space<vmem>>) attributes {dimension_semantics = [#tpu.dimension_semantics<parallel>, #tpu.dimension_semantics<arbitrary>], iteration_bounds = array<i64: 1, 2>, scalar_prefetch = 0 : i64, scratch_operands = 0 : i64, tpu.core_type = #tpu.core_type<tc>, window_params = [{transform_indices = @transform_0, window_bounds = array<i64: 8, 128>}, {transform_indices = @transform_1, window_bounds = array<i64: 8, 128>}, {transform_indices = @transform_2, window_bounds = array<i64: 1, 8, 128>}, {transform_indices = @transform_3, window_bounds = array<i64: 1, 8, 128>}, {transform_indices = @transform_4, window_bounds = array<i64: 1, 8, 128>}]} {
    %c0_i32 = arith.constant 0 : i32
    %0 = arith.cmpi eq, %arg1, %c0_i32 : i32
    %1 = arith.extui %0 : i1 to i32
    %c0_i32_0 = arith.constant 0 : i32
    %2 = arith.cmpi ne, %1, %c0_i32_0 : i32
    scf.if %2 {
      %cst_4 = arith.constant 0.000000e+00 : f32
      %14 = vector.broadcast %cst_4 : f32 to vector<8x128xf32>
      %c0 = arith.constant 0 : index
      %c0_5 = arith.constant 0 : index
      %c0_6 = arith.constant 0 : index
      %15 = vector.load %arg4[%c0, %c0_5, %c0_6] : memref<1x8x128xf32, #tpu.memory_space<vmem>>, vector<1x8x128xf32>
      %16 = vector.shape_cast %15 : vector<1x8x128xf32> to vector<8x128xf32>
      %17 = vector.shape_cast %14 : vector<8x128xf32> to vector<1x8x128xf32>
      tpu.vector_store %arg4[%c0, %c0_5, %c0_6], %17 {strides = array<i32>} : memref<1x8x128xf32, #tpu.memory_space<vmem>>, vector<1x8x128xf32>,
      %cst_7 = arith.constant 0.000000e+00 : f32
      %18 = vector.broadcast %cst_7 : f32 to vector<8x128xf32>
      %c0_8 = arith.constant 0 : index
      %c0_9 = arith.constant 0 : index
      %c0_10 = arith.constant 0 : index
      %19 = vector.load %arg5[%c0_8, %c0_9, %c0_10] : memref<1x8x128xf32, #tpu.memory_space<vmem>>, vector<1x8x128xf32>
      %20 = vector.shape_cast %19 : vector<1x8x128xf32> to vector<8x128xf32>
      %21 = vector.shape_cast %18 : vector<8x128xf32> to vector<1x8x128xf32>
      tpu.vector_store %arg5[%c0_8, %c0_9, %c0_10], %21 {strides = array<i32>} : memref<1x8x128xf32, #tpu.memory_space<vmem>>, vector<1x8x128xf32>,
      %cst_11 = arith.constant 0.000000e+00 : f32
      %22 = vector.broadcast %cst_11 : f32 to vector<8x128xf32>
      %c0_12 = arith.constant 0 : index
      %c0_13 = arith.constant 0 : index
      %c0_14 = arith.constant 0 : index
      %23 = vector.load %arg6[%c0_12, %c0_13, %c0_14] : memref<1x8x128xf32, #tpu.memory_space<vmem>>, vector<1x8x128xf32>
      %24 = vector.shape_cast %23 : vector<1x8x128xf32> to vector<8x128xf32>
      %25 = vector.shape_cast %22 : vector<8x128xf32> to vector<1x8x128xf32>
      tpu.vector_store %arg6[%c0_12, %c0_13, %c0_14], %25 {strides = array<i32>} : memref<1x8x128xf32, #tpu.memory_space<vmem>>, vector<1x8x128xf32>,
    } else {
    }
    %c2_i32 = arith.constant 2 : i32
    %3 = arith.muli %arg0, %c2_i32 : i32
    %4 = arith.addi %3, %arg1 : i32
    %c128_i32 = arith.constant 128 : i32
    %5 = arith.muli %4, %c128_i32 : i32
    %cst = arith.constant 0.000000e+00 : f32
    %6 = vector.broadcast %cst : f32 to vector<8x128xf32>
    %c128_i32_1 = arith.constant 128 : i32
    %7 = arith.addi %5, %c128_i32_1 : i32
    %c195_i32 = arith.constant 195 : i32
    %8 = arith.cmpi sle, %7, %c195_i32 : i32
    %9 = arith.extui %8 : i1 to i32
    %c0_i32_2 = arith.constant 0 : i32
    %10 = arith.cmpi ne, %9, %c0_i32_2 : i32
    scf.if %10 {
      %c0_i32_4 = arith.constant 0 : i32
      %c128_i32_5 = arith.constant 128 : i32
      %14 = arith.muli %c0_i32_4, %c128_i32_5 : i32
      %15 = tpu.assume_multiple %14, 128 : i32
      %c0 = arith.constant 0 : index
      %16 = arith.index_cast %15 : i32 to index
      %17 = vector.load %arg2[%c0, %16] : memref<8x128xf32, #tpu.memory_space<vmem>>, vector<8x128xf32>
      %c0_6 = arith.constant 0 : index
      %18 = arith.index_cast %15 : i32 to index
      %19 = vector.load %arg3[%c0_6, %18] : memref<8x128xf32, #tpu.memory_space<vmem>>, vector<8x128xf32>
      %20 = arith.mulf %17, %19 : vector<8x128xf32>
      %21 = arith.addf %6, %20 : vector<8x128xf32>
      %22 = arith.mulf %17, %17 : vector<8x128xf32>
      %23 = arith.addf %6, %22 : vector<8x128xf32>
      %24 = arith.mulf %19, %19 : vector<8x128xf32>
      %25 = arith.addf %6, %24 : vector<8x128xf32>
      %c1_i32 = arith.constant 1 : i32
      %c0_7 = arith.constant 0 : index
      %c0_8 = arith.constant 0 : index
      %c0_9 = arith.constant 0 : index
      %26 = vector.load %arg4[%c0_7, %c0_8, %c0_9] : memref<1x8x128xf32, #tpu.memory_space<vmem>>, vector<1x8x128xf32>
      %27 = vector.shape_cast %26 : vector<1x8x128xf32> to vector<8x128xf32>
      %28 = arith.addf %27, %21 : vector<8x128xf32>
      %c0_10 = arith.constant 0 : index
      %c0_11 = arith.constant 0 : index
      %c0_12 = arith.constant 0 : index
      %29 = vector.load %arg4[%c0_10, %c0_11, %c0_12] : memref<1x8x128xf32, #tpu.memory_space<vmem>>, vector<1x8x128xf32>
      %30 = vector.shape_cast %29 : vector<1x8x128xf32> to vector<8x128xf32>
      %31 = vector.shape_cast %28 : vector<8x128xf32> to vector<1x8x128xf32>
      tpu.vector_store %arg4[%c0_10, %c0_11, %c0_12], %31 {strides = array<i32>} : memref<1x8x128xf32, #tpu.memory_space<vmem>>, vector<1x8x128xf32>,
      %c0_13 = arith.constant 0 : index
      %c0_14 = arith.constant 0 : index
      %c0_15 = arith.constant 0 : index
      %32 = vector.load %arg5[%c0_13, %c0_14, %c0_15] : memref<1x8x128xf32, #tpu.memory_space<vmem>>, vector<1x8x128xf32>
      %33 = vector.shape_cast %32 : vector<1x8x128xf32> to vector<8x128xf32>
      %34 = arith.addf %33, %23 : vector<8x128xf32>
      %c0_16 = arith.constant 0 : index
      %c0_17 = arith.constant 0 : index
      %c0_18 = arith.constant 0 : index
      %35 = vector.load %arg5[%c0_16, %c0_17, %c0_18] : memref<1x8x128xf32, #tpu.memory_space<vmem>>, vector<1x8x128xf32>
      %36 = vector.shape_cast %35 : vector<1x8x128xf32> to vector<8x128xf32>
      %37 = vector.shape_cast %34 : vector<8x128xf32> to vector<1x8x128xf32>
      tpu.vector_store %arg5[%c0_16, %c0_17, %c0_18], %37 {strides = array<i32>} : memref<1x8x128xf32, #tpu.memory_space<vmem>>, vector<1x8x128xf32>,
      %c0_19 = arith.constant 0 : index
      %c0_20 = arith.constant 0 : index
      %c0_21 = arith.constant 0 : index
      %38 = vector.load %arg6[%c0_19, %c0_20, %c0_21] : memref<1x8x128xf32, #tpu.memory_space<vmem>>, vector<1x8x128xf32>
      %39 = vector.shape_cast %38 : vector<1x8x128xf32> to vector<8x128xf32>
      %40 = arith.addf %39, %25 : vector<8x128xf32>
      %c0_22 = arith.constant 0 : index
      %c0_23 = arith.constant 0 : index
      %c0_24 = arith.constant 0 : index
      %41 = vector.load %arg6[%c0_22, %c0_23, %c0_24] : memref<1x8x128xf32, #tpu.memory_space<vmem>>, vector<1x8x128xf32>
      %42 = vector.shape_cast %41 : vector<1x8x128xf32> to vector<8x128xf32>
      %43 = vector.shape_cast %40 : vector<8x128xf32> to vector<1x8x128xf32>
      tpu.vector_store %arg6[%c0_22, %c0_23, %c0_24], %43 {strides = array<i32>} : memref<1x8x128xf32, #tpu.memory_space<vmem>>, vector<1x8x128xf32>,
    } else {
    }
    %true = arith.constant true
    %11 = arith.xori %8, %true : i1
    %12 = arith.extui %11 : i1 to i32
    %c0_i32_3 = arith.constant 0 : i32
    %13 = arith.cmpi ne, %12, %c0_i32_3 : i32
    scf.if %13 {
      %14 = tpu.iota {dimensions = array<i32: 1>} : vector<8x128xi32>
      %c0_i32_4 = arith.constant 0 : i32
      %c128_i32_5 = arith.constant 128 : i32
      %15 = arith.muli %c0_i32_4, %c128_i32_5 : i32
      %16 = tpu.assume_multiple %15, 128 : i32
      %c195_i32_6 = arith.constant 195 : i32
      %17 = arith.subi %c195_i32_6, %5 : i32
      %c128_i32_7 = arith.constant 128 : i32
      %18 = arith.muli %c0_i32_4, %c128_i32_7 : i32
      %19 = arith.subi %17, %18 : i32
      %20 = vector.broadcast %19 : i32 to vector<8x128xi32>
      %21 = arith.cmpi slt, %14, %20 : vector<8x128xi32>
      %c0 = arith.constant 0 : index
      %22 = arith.index_cast %16 : i32 to index
      %23 = vector.load %arg2[%c0, %22] : memref<8x128xf32, #tpu.memory_space<vmem>>, vector<8x128xf32>
      %cst_8 = arith.constant 0.000000e+00 : f32
      %24 = vector.broadcast %cst_8 : f32 to vector<8x128xf32>
      %25 = arith.select %21, %23, %24 : vector<8x128xi1>, vector<8x128xf32>
      %c0_9 = arith.constant 0 : index
      %26 = arith.index_cast %16 : i32 to index
      %27 = vector.load %arg3[%c0_9, %26] : memref<8x128xf32, #tpu.memory_space<vmem>>, vector<8x128xf32>
      %cst_10 = arith.constant 0.000000e+00 : f32
      %28 = vector.broadcast %cst_10 : f32 to vector<8x128xf32>
      %29 = arith.select %21, %27, %28 : vector<8x128xi1>, vector<8x128xf32>
      %30 = arith.mulf %25, %29 : vector<8x128xf32>
      %31 = arith.addf %6, %30 : vector<8x128xf32>
      %32 = arith.mulf %25, %25 : vector<8x128xf32>
      %33 = arith.addf %6, %32 : vector<8x128xf32>
      %34 = arith.mulf %29, %29 : vector<8x128xf32>
      %35 = arith.addf %6, %34 : vector<8x128xf32>
      %c1_i32 = arith.constant 1 : i32
      %c0_11 = arith.constant 0 : index
      %c0_12 = arith.constant 0 : index
      %c0_13 = arith.constant 0 : index
      %36 = vector.load %arg4[%c0_11, %c0_12, %c0_13] : memref<1x8x128xf32, #tpu.memory_space<vmem>>, vector<1x8x128xf32>
      %37 = vector.shape_cast %36 : vector<1x8x128xf32> to vector<8x128xf32>
      %38 = arith.addf %37, %31 : vector<8x128xf32>
      %c0_14 = arith.constant 0 : index
      %c0_15 = arith.constant 0 : index
      %c0_16 = arith.constant 0 : index
      %39 = vector.load %arg4[%c0_14, %c0_15, %c0_16] : memref<1x8x128xf32, #tpu.memory_space<vmem>>, vector<1x8x128xf32>
      %40 = vector.shape_cast %39 : vector<1x8x128xf32> to vector<8x128xf32>
      %41 = vector.shape_cast %38 : vector<8x128xf32> to vector<1x8x128xf32>
      tpu.vector_store %arg4[%c0_14, %c0_15, %c0_16], %41 {strides = array<i32>} : memref<1x8x128xf32, #tpu.memory_space<vmem>>, vector<1x8x128xf32>,
      %c0_17 = arith.constant 0 : index
      %c0_18 = arith.constant 0 : index
      %c0_19 = arith.constant 0 : index
      %42 = vector.load %arg5[%c0_17, %c0_18, %c0_19] : memref<1x8x128xf32, #tpu.memory_space<vmem>>, vector<1x8x128xf32>
      %43 = vector.shape_cast %42 : vector<1x8x128xf32> to vector<8x128xf32>
      %44 = arith.addf %43, %33 : vector<8x128xf32>
      %c0_20 = arith.constant 0 : index
      %c0_21 = arith.constant 0 : index
      %c0_22 = arith.constant 0 : index
      %45 = vector.load %arg5[%c0_20, %c0_21, %c0_22] : memref<1x8x128xf32, #tpu.memory_space<vmem>>, vector<1x8x128xf32>
      %46 = vector.shape_cast %45 : vector<1x8x128xf32> to vector<8x128xf32>
      %47 = vector.shape_cast %44 : vector<8x128xf32> to vector<1x8x128xf32>
      tpu.vector_store %arg5[%c0_20, %c0_21, %c0_22], %47 {strides = array<i32>} : memref<1x8x128xf32, #tpu.memory_space<vmem>>, vector<1x8x128xf32>,
      %c0_23 = arith.constant 0 : index
      %c0_24 = arith.constant 0 : index
      %c0_25 = arith.constant 0 : index
      %48 = vector.load %arg6[%c0_23, %c0_24, %c0_25] : memref<1x8x128xf32, #tpu.memory_space<vmem>>, vector<1x8x128xf32>
      %49 = vector.shape_cast %48 : vector<1x8x128xf32> to vector<8x128xf32>
      %50 = arith.addf %49, %35 : vector<8x128xf32>
      %c0_26 = arith.constant 0 : index
      %c0_27 = arith.constant 0 : index
      %c0_28 = arith.constant 0 : index
      %51 = vector.load %arg6[%c0_26, %c0_27, %c0_28] : memref<1x8x128xf32, #tpu.memory_space<vmem>>, vector<1x8x128xf32>
      %52 = vector.shape_cast %51 : vector<1x8x128xf32> to vector<8x128xf32>
      %53 = vector.shape_cast %50 : vector<8x128xf32> to vector<1x8x128xf32>
      tpu.vector_store %arg6[%c0_26, %c0_27, %c0_28], %53 {strides = array<i32>} : memref<1x8x128xf32, #tpu.memory_space<vmem>>, vector<1x8x128xf32>,
    } else {
    }
    return
  }
  func.func @transform_0(%arg0: i32, %arg1: i32) -> (i32, i32) {
    %c2_i32 = arith.constant 2 : i32
    %0 = arith.muli %arg0, %c2_i32 : i32
    %1 = arith.addi %0, %arg1 : i32
    %c0_i32 = arith.constant 0 : i32
    %c0_i32_0 = arith.constant 0 : i32
    return %c0_i32, %1 : i32, i32
  }
  func.func @transform_1(%arg0: i32, %arg1: i32) -> (i32, i32) {
    %c2_i32 = arith.constant 2 : i32
    %0 = arith.muli %arg0, %c2_i32 : i32
    %1 = arith.addi %0, %arg1 : i32
    %c0_i32 = arith.constant 0 : i32
    %c0_i32_0 = arith.constant 0 : i32
    return %c0_i32, %1 : i32, i32
  }
  func.func @transform_2(%arg0: i32, %arg1: i32) -> (i32, i32, i32) {
    %c0_i32 = arith.constant 0 : i32
    %c0_i32_0 = arith.constant 0 : i32
    %c0_i32_1 = arith.constant 0 : i32
    return %arg0, %c0_i32, %c0_i32_0 : i32, i32, i32
  }
  func.func @transform_3(%arg0: i32, %arg1: i32) -> (i32, i32, i32) {
    %c0_i32 = arith.constant 0 : i32
    %c0_i32_0 = arith.constant 0 : i32
    %c0_i32_1 = arith.constant 0 : i32
    return %arg0, %c0_i32, %c0_i32_0 : i32, i32, i32
  }
  func.func @transform_4(%arg0: i32, %arg1: i32) -> (i32, i32, i32) {
    %c0_i32 = arith.constant 0 : i32
    %c0_i32_0 = arith.constant 0 : i32
    %c0_i32_1 = arith.constant 0 : i32
    return %arg0, %c0_i32, %c0_i32_0 : i32, i32, i32
  }
}

</mosaic_0001>

<bundles_post_ra>
// kernel: el_dice_loss.1
= control target key start
LH: loop header
LB: loop body
LE: loop exit
PB: predicated region body
PF: predicated region fallthrough
CT: control target
= control target key end

     0   :  { %s548_s15 = smov 0   ;;  %s550_s16 = smov 0   ;;  %s640_s0 = inlined_call_operand.vmem [shape: f32[8,195], index: 0, kind: input, shape index: {}]   ;;  %s641_s1 = inlined_call_operand.vmem [shape: f32[8,195], index: 1, kind: input, shape index: {}]   ;;  %s642_s2 = inlined_call_operand.vmem [shape: f32[1,8,128], index: 2, kind: output, shape index: {0}]   ;;  %s643_s3 = inlined_call_operand.vmem [shape: f32[1,8,128], index: 3, kind: output, shape index: {1}]   ;;  %s644_s4 = inlined_call_operand.vmem [shape: f32[1,8,128], index: 4, kind: output, shape index: {2}]  }
   0x1   :  { %s552_s17 = smov 0  }
   0x2 LB: > { %s24_s18 = sadd.s32 1, %s516_s16  ;;  %p461_p0 = scmp.ge.s32.totalorder %s520_s17, 1  ;;  %s520_s17 = sphi %s552_s17, %s15_s17   ;;  %s516_s16 = sphi %s550_s16, %s646_s16   ;;  %s512_s15 = sphi %s548_s15, %s645_s15  }
   0x3   : > { %p25_p1 = scmp.ge.s32.totalorder %s24_s18, 2  ;;  %p203_p2 = scmp.lt.s32.totalorder %s520_s17, 3 }
   0x5   : > { %s648_s18 = smov (%p25_p1, %s24_s18), 0  ;;  %p204_p3 = pnand %p461_p0, %p203_p2 }
   0x6   : > { %p245_p4 = scmp.lt.s32.totalorder (!%p204_p3), %s512_s15, 1  ;;  %p464_p5 = scmp.ne.s32.totalorder (!%p204_p3), %s512_s15, 0 }
   0x7   : > { %207 = sbr.rel (%p204_p3) target bundleno = 46 (0x2e), region = 28 }
   0xe   : > { %s246_s19 = scalar_select %p245_p4, %s512_s15, 1 }
   0xf   : > { %274 = sbr.rel (%p464_p5) target bundleno = 22 (0x16), region = 32  ;;  %v522_v0 = vmov (!%p464_p5), 0.0  }
  0x10   : > { %s462_s20 = sshll.u32 %s246_s19, 3  ;;  %275 = vst [vmem:[%s642_s2] sm:$0xff] (!%p464_p5), %v522_v0  ;;  %276 = vst [vmem:[%s643_s3] sm:$0xff] (!%p464_p5), %v522_v0 }
  0x11   : > { %s573_s23 = scalar_lea.vmem %s640_s0, %s462_s20  ;;  %s578_s26 = scalar_lea.vmem %s641_s1, %s462_s20  ;;  %277 = vst [vmem:[%s644_s4] sm:$0xff] (!%p464_p5), %v522_v0 }
  0x16 PF: > { %s465_s7 = sshll.u32 %s512_s15, 7 }
  0x17   : > { %s281_s8 = sadd.s32 128, %s465_s7 }
  0x18   : > { %p466_p6 = scmp.gt.s32.totalorder %s281_s8, 195 }
  0x19   : > { %v286_v1 = vld [vmem:[%s573_s23] sm:$0xff] (!%p466_p6) }
  0x1a   : > { %285 = sbr.rel (%p466_p6) target bundleno = 33 (0x21), region = 36  ;;  %v287_v2 = vld [vmem:[%s578_s26] sm:$0xff] (!%p466_p6)  ;;  %v290_v5 = vmul.f32 (!%p466_p6), %v286_v1, %v286_v1 }
  0x1b   : > { %v294_v3 = vld [vmem:[%s642_s2] sm:$0xff] (!%p466_p6)  ;;  %v288_v4 = vmul.f32 (!%p466_p6), %v287_v2, %v286_v1  ;;  %v292_v7 = vmul.f32 (!%p466_p6), %v287_v2, %v287_v2 }
  0x1c   : > { %v297_v6 = vld [vmem:[%s643_s3] sm:$0xff] (!%p466_p6) }
  0x1d   : > { %v300_v8 = vld [vmem:[%s644_s4] sm:$0xff] (!%p466_p6)  ;;  %v295_v9 = vadd.f32 (!%p466_p6), %v294_v3, %v288_v4  ;;  %v298_v10 = vadd.f32 (!%p466_p6), %v297_v6, %v290_v5 }
  0x1e   : > { %v301_v11 = vadd.f32 (!%p466_p6), %v300_v8, %v292_v7 }
  0x1f   : > { %296 = vst [vmem:[%s642_s2] sm:$0xff] (!%p466_p6), %v295_v9  ;;  %299 = vst [vmem:[%s643_s3] sm:$0xff] (!%p466_p6), %v298_v10 }
  0x20   : > { %302 = vst [vmem:[%s644_s4] sm:$0xff] (!%p466_p6), %v301_v11 }
  0x21 PF: > { %p467_p7 = scmp.le.s32.totalorder %s281_s8, 195 }
  0x22   : > { %v307_v12 = vlaneseq (!%p467_p7)  ;;  %s309_s25 = ssub.s32 (!%p467_p7), 195, %s465_s7  ;;  %v312_v15 = vld [vmem:[%s573_s23] sm:$0xff] (!%p467_p7) }
  0x23   : > { %306 = sbr.rel (%p467_p7) target bundleno = 46 (0x2e), region = 40  ;;  %v310_v13 = vstv (!%p467_p7), %s309_s25  ;;  %v314_v16 = vld [vmem:[%s578_s26] sm:$0xff] (!%p467_p7) }
  0x24   : > { %v308_v14 = vand.u32 (!%p467_p7), 127, %v307_v12 }
  0x26   : > { %vm311_vm0 = vcmp.lt.s32.totalorder (!%p467_p7), %v308_v14, %v310_v13  ;;  %v322_v19 = vld [vmem:[%s642_s2] sm:$0xff] (!%p467_p7) }
  0x27   : > { %v313_v17 = vsel (!%p467_p7), %vm311_vm0, %v312_v15, 0.0  ;;  %v315_v18 = vsel (!%p467_p7), %vm311_vm0, %v314_v16, 0.0  ;;  %v325_v20 = vld [vmem:[%s643_s3] sm:$0xff] (!%p467_p7) }
  0x28   : > { %v328_v21 = vld [vmem:[%s644_s4] sm:$0xff] (!%p467_p7)  ;;  %v316_v22 = vmul.f32 (!%p467_p7), %v315_v18, %v313_v17  ;;  %v318_v23 = vmul.f32 (!%p467_p7), %v313_v17, %v313_v17  ;;  %v320_v24 = vmul.f32 (!%p467_p7), %v315_v18, %v315_v18 }
  0x2a   : > { %v323_v25 = vadd.f32 %v322_v19, %v316_v22  ;;  %v326_v26 = vadd.f32 %v325_v20, %v318_v23  ;;  %v329_v27 = vadd.f32 %v328_v21, %v320_v24 }
  0x2c   : > { %324 = vst [vmem:[%s642_s2] sm:$0xff] %v323_v25  ;;  %327 = vst [vmem:[%s643_s3] sm:$0xff] %v326_v26 }
  0x2d   : > { %330 = vst [vmem:[%s644_s4] sm:$0xff] %v329_v27 }
  0x2e PF: > { %s15_s17 = sadd.s32 1, %s520_s17   ;;  %s645_s15 = smov %s516_s16 }
  0x2f   : > { %p12_p8 = scmp.ge.s32.totalorder %s15_s17, 4   ;;  %s646_s16 = smov %s648_s18 }
  0x31   :  { %14 = sbr.rel (!%p12_p8) target bundleno = 2 (0x2), region = 97 }

</bundles_post_ra>
